<compile_context>
chip_gen: v7x
topology: tpu7x:2x2x1
jax: 0.10.0
libtpu: 0.0.40
codegen_flags: <defaults>
</compile_context>

<pallas_src>
import functools

import jax
import jax.numpy as jnp
from jax.experimental import pallas as pl
from jax.experimental.pallas import tpu as pltpu


def _cdiv(a, b):
    return -(-a // b)


def _tpu_config():
    """Returns (per-core VMEM capacity in bytes, TensorCores per chip)."""
    vmem_cap = 128 * 1024 * 1024
    num_cores = 1
    try:
        info = pltpu.get_tpu_info()
        cap = getattr(info, "vmem_capacity_bytes", None)
        if cap:
            vmem_cap = int(cap)
        for attr in ("num_cores", "tensorcores_per_chip", "core_count"):
            nc = getattr(info, attr, None)
            if nc:
                num_cores = int(nc)
                break
    except Exception:
        pass
    try:
        kind = jax.devices()[0].device_kind.lower()
    except Exception:
        kind = ""
    if "7" in kind:  # v7x: 2 TensorCores/chip, 64 MiB VMEM per core.
        num_cores = max(num_cores, 2)
        vmem_cap = min(vmem_cap, 64 * 1024 * 1024)
    return vmem_cap, num_cores


def _choose_tile_b(B, D, itemsize, sublane, vmem_limit, vmem_cap):
    bytes_per_row = 3 * D * itemsize            # anchor + positive + negative
    data_budget = int(vmem_limit * 0.8)         # headroom for compiler scratch
    # Per-step DMA target so the ~0.35us grid-step overhead stays <10% of the
    # per-step HBM transfer time (bigger target on v7x's 3.2 TB/s HBM).
    step_target = (10 if vmem_cap <= 64 * 1024 * 1024 else 4) * 1024 * 1024
    tb_target = _cdiv(step_target, bytes_per_row)
    tb_vmem = data_budget // (2 * bytes_per_row)    # 2 pipeline buffers/input
    tb = max(sublane, min(tb_target, tb_vmem))
    tb = max(sublane, (tb // sublane) * sublane)    # sublane-aligned rows
    if tb >= B:
        return B                                    # single full-extent block
    return tb


def _triplet_loss_kernel(a_ref, p_ref, n_ref, out_ref, *,
                         margin, total_b, tile_b, tiles_per_split, needs_mask):
    """Processes one (tile_b, D) batch tile per grid step; out_ref is a
    resident (1, 1) partial-sum accumulator for the current split/core."""
    c = pl.program_id(0)          # split / TensorCore index ("parallel")
    i = pl.program_id(1)          # tile index within the split ("arbitrary")

    @pl.when(i == 0)
    def _init():
        out_ref[...] = jnp.zeros_like(out_ref)

    a = a_ref[...].astype(jnp.float32)
    p = p_ref[...].astype(jnp.float32)
    n = n_ref[...].astype(jnp.float32)

    # Fused single row-reduction:
    #   (a - p)^2 - (a - n)^2 == (n - p) * (2a - p - n)
    d = (n - p) * (2.0 * a - p - n)
    dsum = jnp.sum(d, axis=1, keepdims=True)                  # (tile_b, 1)
    losses = jnp.maximum(dsum + jnp.float32(margin), 0.0)     # (tile_b, 1)

    if needs_mask:
        gi = c * tiles_per_split + i                # global tile index
        is_edge = gi * tile_b + tile_b > total_b    # tile has padded rows

        @pl.when(is_edge)
        def _masked():
            # Mask BEFORE summation: padded-block contents are undefined and
            # ghost tiles (clamped block index) re-read valid data whose
            # nominal global rows are >= total_b.
            row = gi * tile_b + jax.lax.broadcasted_iota(
                jnp.int32, losses.shape, 0)
            out_ref[...] += jnp.sum(jnp.where(row < total_b, losses, 0.0))

        @pl.when(jnp.logical_not(is_edge))
        def _full():
            out_ref[...] += jnp.sum(losses)
    else:
        out_ref[...] += jnp.sum(losses)


def triplet_loss(anchor, positive, negative, *, margin, size_average=True,
                 tile_b=None):
    """Pallas TPU implementation of TripletLoss.forward.

    anchor / positive / negative: (B, D) arrays. Returns a scalar (float32).
    """
    assert anchor.shape == positive.shape == negative.shape
    assert anchor.ndim == 2
    B, D = anchor.shape
    itemsize = jnp.dtype(anchor.dtype).itemsize
    sublane = max(8, 32 // itemsize)     # 8 f32 / 16 bf16 / 32 int8-fp8

    vmem_cap, num_cores = _tpu_config()
    vmem_limit = int(vmem_cap * 0.8)     # ~102 MiB on v5e/v6e, ~51 MiB on v7x

    if tile_b is None:
        tb = _choose_tile_b(B, D, itemsize, sublane, vmem_limit, vmem_cap)
    else:
        tb = min(int(tile_b), B)
        if tb < B:
            tb = max(sublane, (tb // sublane) * sublane)

    total_tiles = _cdiv(B, tb)
    num_splits = num_cores if (num_cores > 1 and total_tiles >= 2) else 1
    tiles_per_split = _cdiv(total_tiles, num_splits)
    covered_rows = num_splits * tiles_per_split * tb
    needs_mask = covered_rows > B
    last_tile = total_tiles - 1

    if num_splits * tiles_per_split == total_tiles:
        def in_index(c, i):
            return (c * tiles_per_split + i, 0)
    else:
        # Odd tile count split across cores: clamp the ghost tile's block
        # index to the last valid tile; its rows are fully masked in-kernel.
        def in_index(c, i):
            return (jnp.minimum(c * tiles_per_split + i, last_tile), 0)

    kernel = functools.partial(
        _triplet_loss_kernel,
        margin=float(margin),
        total_b=B,
        tile_b=tb,
        tiles_per_split=tiles_per_split,
        needs_mask=needs_mask,
    )

    cost = pl.CostEstimate(
        flops=6 * B * D,
        transcendentals=0,
        bytes_accessed=3 * B * D * itemsize + 4 * num_splits,
    )

    partials = pl.pallas_call(
        kernel,
        out_shape=jax.ShapeDtypeStruct((num_splits, 1), jnp.float32),
        grid=(num_splits, tiles_per_split),
        in_specs=[
            pl.BlockSpec((tb, D), in_index),
            pl.BlockSpec((tb, D), in_index),
            pl.BlockSpec((tb, D), in_index),
        ],
        out_specs=pl.BlockSpec((1, 1), lambda c, i: (c, 0)),
        compiler_params=pltpu.CompilerParams(
            dimension_semantics=("parallel", "arbitrary"),
            vmem_limit_bytes=vmem_limit,
        ),
        cost_estimate=cost,
    )(anchor, positive, negative)

    total = jnp.sum(partials)
    if size_average:
        return total / jnp.float32(B)
    return total


def _reference(anchor, positive, negative, margin, size_average=True):
    a = anchor.astype(jnp.float32)
    p = positive.astype(jnp.float32)
    n = negative.astype(jnp.float32)
    dp = jnp.sum((a - p) ** 2, axis=1)
    dn = jnp.sum((a - n) ** 2, axis=1)
    losses = jnp.maximum(dp - dn + margin, 0.0)
    return jnp.mean(losses) if size_average else jnp.sum(losses)


if __name__ == "__main__":
    key = jax.random.PRNGKey(0)
    k_a, k_p, k_n = jax.random.split(key, 3)

    margin = 1.0

    # --- Small case: single full-extent block. ---
    B, D = 8, 32
    anchor = jax.random.normal(k_a, (B, D), dtype=jnp.float32)
    positive = jax.random.normal(k_p, (B, D), dtype=jnp.float32)
    negative = jax.random.normal(k_n, (B, D), dtype=jnp.float32)

    out = jax.block_until_ready(
        triplet_loss(anchor, positive, negative, margin=margin,
                     size_average=True))
    ref = _reference(anchor, positive, negative, margin, size_average=True)
    assert jnp.allclose(out, ref, rtol=1e-5, atol=1e-4), (out, ref)

    out_sum = jax.block_until_ready(
        triplet_loss(anchor, positive, negative, margin=margin,
                     size_average=False))
    ref_sum = _reference(anchor, positive, negative, margin,
                         size_average=False)
    assert jnp.allclose(out_sum, ref_sum, rtol=1e-5, atol=1e-4), (out_sum, ref_sum)

    # --- Tiled case: B not a multiple of tile_b exercises the grid loop,
    #     resident accumulators, the (optional) 2-core split, and masking. ---
    B2, D2 = 20, 32
    k_a2, k_p2, k_n2 = jax.random.split(jax.random.PRNGKey(1), 3)
    anchor2 = jax.random.normal(k_a2, (B2, D2), dtype=jnp.float32)
    positive2 = jax.random.normal(k_p2, (B2, D2), dtype=jnp.float32)
    negative2 = jax.random.normal(k_n2, (B2, D2), dtype=jnp.float32)

    out2 = jax.block_until_ready(
        triplet_loss(anchor2, positive2, negative2, margin=margin,
                     size_average=True, tile_b=8))
    ref2 = _reference(anchor2, positive2, negative2, margin,
                      size_average=True)
    assert jnp.allclose(out2, ref2, rtol=1e-5, atol=1e-4), (out2, ref2)

    out2_sum = jax.block_until_ready(
        triplet_loss(anchor2, positive2, negative2, margin=margin,
                     size_average=False, tile_b=8))
    ref2_sum = _reference(anchor2, positive2, negative2, margin,
                          size_average=False)
    assert jnp.allclose(out2_sum, ref2_sum, rtol=1e-5, atol=1e-4), (out2_sum, ref2_sum)

    # --- bf16 inputs: narrow dtype streamed as-is, f32 math in-kernel,
    #     16-row sublane-aligned tiles, padded last tile. ---
    B3, D3 = 24, 128
    k_a3, k_p3, k_n3 = jax.random.split(jax.random.PRNGKey(2), 3)
    anchor3 = jax.random.normal(k_a3, (B3, D3), dtype=jnp.bfloat16)
    positive3 = jax.random.normal(k_p3, (B3, D3), dtype=jnp.bfloat16)
    negative3 = jax.random.normal(k_n3, (B3, D3), dtype=jnp.bfloat16)

    out3 = jax.block_until_ready(
        triplet_loss(anchor3, positive3, negative3, margin=margin,
                     size_average=True, tile_b=16))
    ref3 = _reference(anchor3, positive3, negative3, margin,
                      size_average=True)
    assert jnp.allclose(out3, ref3, rtol=1e-4, atol=1e-3), (out3, ref3)

    print("KERNEL_OK")
</pallas_src>

<mosaic_0001>
module attributes {stable_mosaic.version = 11 : i64} {
  func.func @_triplet_loss_kernel(%arg0: i32, %arg1: i32, %arg2: memref<8x32xf32, #tpu.memory_space<vmem>>, %arg3: memref<8x32xf32, #tpu.memory_space<vmem>>, %arg4: memref<8x32xf32, #tpu.memory_space<vmem>>, %arg5: memref<1x1xf32, #tpu.memory_space<vmem>>) attributes {dimension_semantics = [#tpu.dimension_semantics<parallel>, #tpu.dimension_semantics<arbitrary>], iteration_bounds = array<i64: 1, 1>, scalar_prefetch = 0 : i64, scratch_operands = 0 : i64, tpu.core_type = #tpu.core_type<tc>, window_params = [{transform_indices = @transform_0, window_bounds = array<i64: 8, 32>}, {transform_indices = @transform_1, window_bounds = array<i64: 8, 32>}, {transform_indices = @transform_2, window_bounds = array<i64: 8, 32>}, {transform_indices = @transform_3, window_bounds = array<i64: 1, 1>}]} {
    %c0_i32 = arith.constant 0 : i32
    %0 = arith.cmpi eq, %arg1, %c0_i32 : i32
    %1 = arith.extui %0 : i1 to i32
    %c0_i32_0 = arith.constant 0 : i32
    %2 = arith.cmpi ne, %1, %c0_i32_0 : i32
    scf.if %2 {
      %cst_14 = arith.constant 0.000000e+00 : f32
      %26 = vector.broadcast %cst_14 : f32 to vector<1x1xf32>
      %c0_15 = arith.constant 0 : index
      %c0_16 = arith.constant 0 : index
      %27 = vector.load %arg5[%c0_15, %c0_16] : memref<1x1xf32, #tpu.memory_space<vmem>>, vector<1x1xf32>
      tpu.vector_store %arg5[%c0_15, %c0_16], %26 {strides = array<i32>} : memref<1x1xf32, #tpu.memory_space<vmem>>, vector<1x1xf32>,
    } else {
    }
    %c0 = arith.constant 0 : index
    %c0_1 = arith.constant 0 : index
    %3 = vector.load %arg2[%c0, %c0_1] : memref<8x32xf32, #tpu.memory_space<vmem>>, vector<8x32xf32>
    %c0_2 = arith.constant 0 : index
    %c0_3 = arith.constant 0 : index
    %4 = vector.load %arg3[%c0_2, %c0_3] : memref<8x32xf32, #tpu.memory_space<vmem>>, vector<8x32xf32>
    %c0_4 = arith.constant 0 : index
    %c0_5 = arith.constant 0 : index
    %5 = vector.load %arg4[%c0_4, %c0_5] : memref<8x32xf32, #tpu.memory_space<vmem>>, vector<8x32xf32>
    %6 = arith.subf %5, %4 : vector<8x32xf32>
    %cst = arith.constant 2.000000e+00 : f32
    %7 = vector.broadcast %cst : f32 to vector<8x32xf32>
    %8 = arith.mulf %7, %3 : vector<8x32xf32>
    %9 = arith.subf %8, %4 : vector<8x32xf32>
    %10 = arith.subf %9, %5 : vector<8x32xf32>
    %11 = arith.mulf %6, %10 : vector<8x32xf32>
    %cst_6 = arith.constant dense<0.000000e+00> : vector<8xf32>
    %12 = vector.multi_reduction <add>, %11, %cst_6 [1] : vector<8x32xf32> to vector<8xf32>
    %13 = vector.shape_cast %12 : vector<8xf32> to vector<8x1xf32>
    %cst_7 = arith.constant 1.000000e+00 : f32
    %14 = vector.broadcast %cst_7 : f32 to vector<8x1xf32>
    %15 = arith.addf %13, %14 : vector<8x1xf32>
    %cst_8 = arith.constant 0.000000e+00 : f32
    %16 = vector.broadcast %cst_8 : f32 to vector<8x1xf32>
    %17 = arith.maximumf %15, %16 : vector<8x1xf32>
    %c0_9 = arith.constant 0 : index
    %c0_10 = arith.constant 0 : index
    %18 = vector.load %arg5[%c0_9, %c0_10] : memref<1x1xf32, #tpu.memory_space<vmem>>, vector<1x1xf32>
    %19 = vector.shape_cast %17 : vector<8x1xf32> to vector<1x8x1xf32>
    %cst_11 = arith.constant dense<0.000000e+00> : vector<1xf32>
    %20 = vector.multi_reduction <add>, %19, %cst_11 [1, 2] : vector<1x8x1xf32> to vector<1xf32>
    %21 = vector.shape_cast %20 : vector<1xf32> to vector<1x1x1xf32>
    %22 = vector.extract %21[0, 0, 0] : f32 from vector<1x1x1xf32>
    %23 = vector.broadcast %22 : f32 to vector<1x1xf32>
    %24 = arith.addf %18, %23 : vector<1x1xf32>
    %c0_12 = arith.constant 0 : index
    %c0_13 = arith.constant 0 : index
    %25 = vector.load %arg5[%c0_12, %c0_13] : memref<1x1xf32, #tpu.memory_space<vmem>>, vector<1x1xf32>
    tpu.vector_store %arg5[%c0_12, %c0_13], %24 {strides = array<i32>} : memref<1x1xf32, #tpu.memory_space<vmem>>, vector<1x1xf32>,
    return
  }
  func.func @transform_0(%arg0: i32, %arg1: i32) -> (i32, i32) {
    %c1_i32 = arith.constant 1 : i32
    %0 = arith.muli %arg0, %c1_i32 : i32
    %1 = arith.addi %0, %arg1 : i32
    %c0_i32 = arith.constant 0 : i32
    %c0_i32_0 = arith.constant 0 : i32
    return %1, %c0_i32 : i32, i32
  }
  func.func @transform_1(%arg0: i32, %arg1: i32) -> (i32, i32) {
    %c1_i32 = arith.constant 1 : i32
    %0 = arith.muli %arg0, %c1_i32 : i32
    %1 = arith.addi %0, %arg1 : i32
    %c0_i32 = arith.constant 0 : i32
    %c0_i32_0 = arith.constant 0 : i32
    return %1, %c0_i32 : i32, i32
  }
  func.func @transform_2(%arg0: i32, %arg1: i32) -> (i32, i32) {
    %c1_i32 = arith.constant 1 : i32
    %0 = arith.muli %arg0, %c1_i32 : i32
    %1 = arith.addi %0, %arg1 : i32
    %c0_i32 = arith.constant 0 : i32
    %c0_i32_0 = arith.constant 0 : i32
    return %1, %c0_i32 : i32, i32
  }
  func.func @transform_3(%arg0: i32, %arg1: i32) -> (i32, i32) {
    %c0_i32 = arith.constant 0 : i32
    %c0_i32_0 = arith.constant 0 : i32
    return %arg0, %c0_i32 : i32, i32
  }
}

</mosaic_0001>

<bundles_post_ra>
// kernel: tpu_custom_call.1
= control target key start
LH: loop header
LB: loop body
LE: loop exit
PB: predicated region body
PF: predicated region fallthrough
CT: control target
= control target key end

     0   :  { %8 = vsyncpa [#allocation3], 0  ;;  %s290_s0 = inlined_call_operand.hbm [shape: f32[8,32], index: 0, kind: input, shape index: {}]   ;;  %s291_s1 = inlined_call_operand.hbm [shape: f32[8,32], index: 1, kind: input, shape index: {}]   ;;  %s292_s2 = inlined_call_operand.hbm [shape: f32[8,32], index: 2, kind: input, shape index: {}]   ;;  %s293_s3 = inlined_call_operand.hbm [shape: f32[1,1], index: 3, kind: output, shape index: {}]  }
   0x1   :  { %9 = vsyncpa [#allocation6], 0 }
   0x2   :  { %10 = vsyncpa [#allocation4], 0  ;;  %s215_s12 = smov [#allocation5]   ;;  %s216_s14 = smov [#allocation2]  }
   0x3   :  { %s33_s13 = sshll.u32 %s215_s12, 4  ;;  %s20_s15 = sshll.u32 %s216_s14, 4  ;;  %s34_s13 = int_to_ptr.vmem [resolvable:$true] %s33_s13  ;;  %s21_s15 = int_to_ptr.vmem [resolvable:$true] %s20_s15 }
   0x4   :  { %s121_s18 = scalar_lea.hbm %s291_s1, 128 }
   0x5   :  { %p122_p0 = scmp.ne.s32.totalorder %s291_s1, %s121_s18  ;;  %p125_p1 = scmp.lt.u32.totalorder %s121_s18, %s291_s1 }
   0x7   :  { %p127_p2 = pnand %p125_p1, %p122_p0 }
   0x9   :  { %130 = shalt.err (!%p127_p2)
}
   0xa   :  { %s131_s23 = scalar_lea.vmem %s34_s13, 128  ;;  %p136_p4 = scmp.lt.s32.totalorder %s34_s13, %s34_s13 }
   0xb   :  { %p132_p3 = scmp.ne.s32.totalorder %s34_s13, %s131_s23  ;;  %p137_p5 = scmp.lt.s32.totalorder %s131_s23, %s131_s23 }
   0xd   :  { %p138_p6 = por %p137_p5, %p136_p4 }
   0xf   :  { %p139_p7 = pnand %p138_p6, %p132_p3 }
  0x11   :  { %142 = shalt.err (!%p139_p7)
}
  0x12   :  { %36 = dma.hbm_to_vmem [thread:$0]  %s291_s1, 128, %s34_s13, [#allocation6]  }
  0x13   :  { %s143_s28 = scalar_lea.hbm %s290_s0, 128 }
  0x14   :  { %p144_p8 = scmp.ne.s32.totalorder %s290_s0, %s143_s28  ;;  %p147_p9 = scmp.lt.u32.totalorder %s143_s28, %s290_s0 }
  0x16   :  { %p149_p10 = pnand %p147_p9, %p144_p8 }
  0x18   :  { %152 = shalt.err (!%p149_p10)
}
  0x19   :  { %s153_s6 = scalar_lea.vmem %s21_s15, 128  ;;  %p158_p12 = scmp.lt.s32.totalorder %s21_s15, %s21_s15 }
  0x1a   :  { %p154_p11 = scmp.ne.s32.totalorder %s21_s15, %s153_s6  ;;  %p159_p13 = scmp.lt.s32.totalorder %s153_s6, %s153_s6 }
  0x1c   :  { %p160_p0 = por %p159_p13, %p158_p12 }
  0x1e   :  { %p161_p1 = pnand %p160_p0, %p154_p11 }
  0x20   :  { %164 = shalt.err (!%p161_p1)
}
  0x21   :  { %23 = dma.hbm_to_vmem [thread:$0]  %s290_s0, 128, %s21_s15, [#allocation3]  }
  0x22   :  { %s217_s8 = smov [#allocation7]   ;;  %s165_s12 = scalar_lea.hbm %s292_s2, 128 }
  0x23   :  { %s46_s9 = sshll.u32 %s217_s8, 4  ;;  %p166_p2 = scmp.ne.s32.totalorder %s292_s2, %s165_s12  ;;  %s47_s9 = int_to_ptr.vmem [resolvable:$true] %s46_s9 }
  0x24   :  { %p169_p3 = scmp.lt.u32.totalorder %s165_s12, %s292_s2 }
  0x26   :  { %p171_p4 = pnand %p169_p3, %p166_p2 }
  0x28   :  { %174 = shalt.err (!%p171_p4)
}
  0x29   :  { %s175_s18 = scalar_lea.vmem %s47_s9, 128  ;;  %p180_p6 = scmp.lt.s32.totalorder %s47_s9, %s47_s9 }
  0x2a   :  { %p176_p5 = scmp.ne.s32.totalorder %s47_s9, %s175_s18  ;;  %p181_p7 = scmp.lt.s32.totalorder %s175_s18, %s175_s18 }
  0x2c   :  { %p182_p8 = por %p181_p7, %p180_p6 }
  0x2e   :  { %p183_p9 = pnand %p182_p8, %p176_p5 }
  0x30   :  { %186 = shalt.err (!%p183_p9)
}
  0x31   :  { %49 = dma.hbm_to_vmem [thread:$0]  %s292_s2, 128, %s47_s9, [#allocation6]  }
  0x32   :  { %209 = dma.done.wait [#allocation3], 128  }
  0x33   :  { %210 = vsyncadd [#allocation3], 4294967168 }
  0x34   :  { %211 = dma.done.wait [#allocation6], 256  }
  0x35   :  { %212 = vsyncadd [#allocation6], 4294967040  ;;  %vm66_vm0 = vcmask 0   ;;  %v218_v0 = vmov 0.0   ;;  %v68_v1 = vld [vmem:[#allocation2] sm:$0xff]  ;;  %v69_v2 = vld [vmem:[#allocation5] sm:$0xff] }
  0x36   :  { %67 = vst.msk [vmem:[#allocation8] sm:$0x1] %vm66_vm0, %v218_v0  ;;  %v70_v3 = vld [vmem:[#allocation7] sm:$0xff]  ;;  %v72_v4 = vmul.f32 2.0, %v68_v1  ;;  %vm76_vm1 = vcmask 261120   ;;  %vm83_vm2 = vcmask 7168  }
  0x37   :  { %v71_v5 = vsub.f32 %v70_v3, %v69_v2  ;;  %s219_s2 = smov [#allocation8]  }
  0x38   :  { %v73_v6 = vsub.f32 %v72_v4, %v69_v2  ;;  %s104_s19 = sshll.u32 %s219_s2, 4  ;;  %s105_s19 = int_to_ptr.vmem [resolvable:$true] %s104_s19 }
  0x39   :  { %s187_s21 = scalar_lea.vmem %s105_s19, 16  ;;  %s191_s22 = scalar_lea.vmem %s105_s19, 32 }
  0x3a   :  { %v74_v7 = vsub.f32 %v73_v6, %v70_v3  ;;  %p188_p10 = scmp.ne.s32.totalorder %s105_s19, %s187_s21  ;;  %p192_p11 = scmp.lt.s32.totalorder %s105_s19, %s105_s19 }
  0x3b   :  { %p193_p12 = scmp.lt.s32.totalorder %s191_s22, %s187_s21 }
  0x3c   :  { %v75_v8 = vmul.f32 %v74_v7, %v71_v5 }
  0x3d   :  { %v82_v21 = vld [vmem:[#allocation8] sm:$0x1]  ;;  %p194_p13 = por %p193_p12, %p192_p11 }
  0x3e   :  { %v77_v9 = vsel %vm76_vm1, %v75_v8, 0.0 }
  0x3f   :  { %78 = vadd.xlane.f32.xlu0 %v77_v9  ;;  %p195_p0 = pnand %p194_p13, %p188_p10 }
  0xcc   :  { %v79_v10 = vpop.xlane.xlu0 %78 }
  0xcd   :  { %v80_v11 = vadd.f32 1.0, %v79_v10 }
  0xcf   :  { %v81_v12 = vmax.f32 %v80_v11, 0.0 }
  0xd1   :  { %v84_v13 = vsel %vm83_vm2, %v81_v12, 0.0 }
  0xd2   :  { %85 = vadd.xlane.f32.xlu0 %v84_v13 }
 0x15f   :  { %v86_v14 = vpop.xlane.xlu0 %85 }
 0x160   :  { %v87_v15 = vrot.slane %v86_v14, 4 }
 0x162   :  { %v88_v16 = vadd.f32 %v87_v15, %v86_v14 }
 0x164   :  { %v89_v17 = vrot.slane %v88_v16, 2 }
 0x166   :  { %v90_v18 = vadd.f32 %v89_v17, %v88_v16 }
 0x168   :  { %v91_v19 = vrot.slane %v90_v18, 1 }
 0x16a   :  { %v92_v20 = vadd.f32 %v91_v19, %v90_v18 }
 0x16c   :  { %114 = vpush %v92_v20 }
 0x19d   :  { %s115_s20 = spop %114 }
 0x19e   :  { %v94_v22 = vstv %s115_s20 }
 0x19f   :  { %v95_v23 = vadd.f32 %v94_v22, %v82_v21 }
 0x1a1   :  { %97 = vst.msk [vmem:[#allocation8] sm:$0x1] %vm66_vm0, %v95_v23 }
 0x1a2   :  { %198 = shalt.err (!%p195_p0)
}
 0x1a3   :  { %s199_s25 = scalar_lea.hbm %s293_s3, 16 }
 0x1a4   :  { %p200_p1 = scmp.ne.s32.totalorder %s293_s3, %s199_s25  ;;  %p203_p2 = scmp.lt.u32.totalorder %s199_s25, %s293_s3 }
 0x1a6   :  { %p205_p3 = pnand %p203_p2, %p200_p1 }
 0x1a8   :  { %208 = shalt.err (!%p205_p3)
}
 0x1a9   :  { %107 = dma.vmem_to_hbm [thread:$0]  %s105_s19, 16, %s293_s3, [#allocation4]  }
 0x1aa   :  { %213 = dma.done.wait [#allocation4], 16  }
 0x1ab   :  { %214 = vsyncadd [#allocation4], 4294967280 }
 0x1ac   :  { %111 = vsyncpa [#allocation3], 1 }
 0x1ad   :  { %112 = vsyncpa [#allocation6], 1 }
 0x1ae   :  { %113 = vsyncpa [#allocation4], 1 }

</bundles_post_ra>
